<compile_context>
chip_gen: v6e
topology: v6e:2x2x1
jax: 0.10.0
libtpu: 0.0.40
codegen_flags: <defaults>
</compile_context>

<pallas_src>
import numpy as np
import jax
import jax.numpy as jnp
from jax.experimental import pallas as pl
from jax.experimental.pallas import tpu as pltpu

# ---- constants copied from the PyTorch module ----
Q_BITS = 4                      # num_of_bits
NUM_ADCS = 7                    # p
VDD = 1.0
VR = VDD / (2 ** Q_BITS)        # Vr
VREF = VR                       # Vref
NOISE_SIGMA = 0.3
AMPLITUDE = 10000.0
DELTA = 1e-30                   # numerically lost after *AMPLITUDE fold in f32
NOISY_TRAINING = True

N_COEF = Q_BITS * (Q_BITS - 1) // 2     # 6 cross-bit coefficients
LANES = 1024                    # lane-dense last dim (multiple of 128)


def _round_up(a, b):
    return ((a + b - 1) // b) * b


def _select_tiling():
    """Per-generation (tile-row cap, vmem_limit_bytes).

    v5e/v6e have 128 MiB physical VMEM -> 1024-row tiles; v7x has 64 MiB per
    TensorCore -> cap at 512 rows (Q is bf16 so this fits with headroom).
    """
    try:
        vmem = int(pltpu.get_tpu_info().vmem_capacity_bytes)
    except Exception:
        vmem = 64 << 20                     # conservative (v7x per-TC)
    if vmem >= (120 << 20):                 # v5e / v6e
        return 1024, 100 << 20
    return 512, 56 << 20                    # v7x / unknown


def _build_w_tensor():
    """Deterministic parameter init: matrix2vector(W_init) -> shape (10, 1)."""
    W = np.zeros((Q_BITS, Q_BITS), dtype=np.float32)
    for i in range(Q_BITS):
        W[i, 0] = 2 ** i
        for j in range(Q_BITS):
            if j > i:
                W[i, j] = 2 ** j
    vals = [W[i, j] for i in range(Q_BITS) for j in reversed(range(Q_BITS))
            if W[i, j] != 0]
    return np.asarray(vals, dtype=np.float32).reshape(-1, 1)   # (10, 1)


def _fold_constants(w_noisy_flat):
    """Fold the scalar algebra of the SAR loop.

    For bit j:  bit_sum_j = off_j + sum_k c_{j,k} * Q_k  with c = 0.5*Vr*w[m].
    Everything is pre-scaled by AMPLITUDE (and +delta folded) so the per-bit
    vector work is:  arg = A*x - aoff[j] - sum acoef*Q_k ;  Q_j = tanh(arg).
    Returns (aoff [Q_BITS], acoef [N_COEF]) in the kernel's traversal order.
    """
    m = int(w_noisy_flat.shape[0]) - 1
    aoffs = [None] * Q_BITS
    acoefs = []
    for j in reversed(range(Q_BITS)):
        off = w_noisy_flat[m] * VREF
        m -= 1
        for k in range(j + 1, Q_BITS):
            c = 0.5 * VR * w_noisy_flat[m]
            off = off + c
            acoefs.append(AMPLITUDE * c)
            m -= 1
        aoffs[j] = AMPLITUDE * (off - DELTA)
    aoff = jnp.stack(aoffs).astype(jnp.float32)      # (Q_BITS,)
    acoef = jnp.stack(acoefs).astype(jnp.float32)    # (N_COEF,)
    return aoff, acoef


def _make_kernel(training: bool):
    """aoff_ref/acoef_ref: SMEM folded constants.  x_ref: VMEM [TR, LANES].
    q_ref: VMEM [TR, LANES] f32.  bits_ref: VMEM [Q_BITS, TR, LANES] bf16."""

    def kernel(aoff_ref, acoef_ref, x_ref, q_ref, bits_ref):
        # Hoist all SMEM scalar reads to kernel entry.
        aoff = [aoff_ref[j] for j in range(Q_BITS)]
        acoef = [acoef_ref[t] for t in range(N_COEF)]

        ax = AMPLITUDE * x_ref[...]                   # [TR, LANES] f32

        bits = [None] * Q_BITS
        t = 0
        # successive-approximation loop, unrolled at trace time (Q_BITS = 4)
        for j in reversed(range(Q_BITS)):
            arg = ax - aoff[j]
            for k in range(j + 1, Q_BITS):
                arg = arg - acoef[t] * bits[k]
                t += 1
            if training:
                bits[j] = jnp.tanh(arg)               # EUP; keeps gradient path
            else:
                bits[j] = jnp.where(arg > 0.0, 1.0, -1.0)   # VPU select, no EUP

        # reconstruct the quantized analog value: constant + 4 FMAs (f32)
        q = (0.5 * VR * (2 ** Q_BITS - 1)) + (0.5 * VR) * bits[0]
        for b in range(1, Q_BITS):
            q = q + (0.5 * VR * (2.0 ** b)) * bits[b]
        q_ref[...] = q.astype(q_ref.dtype)

        for b in range(Q_BITS):                       # lane-dense bf16 stores
            bits_ref[b, :, :] = bits[b].astype(bits_ref.dtype)

    return kernel


def quantization_layer_forward(x, w_tensor, noise_key, *, training=True,
                               bit_major_output=False, max_rows_per_tile=None):
    """Mirrors QuantizationLayer.forward.

    x: [B, NUM_ADCS] float32, w_tensor: [10, 1] float32.
    Returns (q [B, P] f32, Q [B, P, Q_BITS] f32, W_tensor_noisy [10, 1] f32).
    With bit_major_output=True, Q is returned bit-major [Q_BITS, B, P] in
    bf16 (no transpose / upcast) for consumers that can take that layout.
    """
    w_flat = w_tensor.reshape(-1).astype(jnp.float32)
    if NOISY_TRAINING:
        # torch.randn_like(W) * noise_sigma ** 0.5  (parameter glue, plain JAX)
        noise = jax.random.normal(noise_key, w_flat.shape, dtype=jnp.float32)
        w_noisy = w_flat + noise * (NOISE_SIGMA ** 0.5)
    else:
        w_noisy = w_flat

    aoff, acoef = _fold_constants(w_noisy)

    B, P = x.shape
    n = B * P
    rows = max(1, -(-n // LANES))

    tr_max, vmem_limit = _select_tiling()
    if max_rows_per_tile is not None:      # test hook: force multi-tile paths
        tr_max = max_rows_per_tile

    if rows <= 8:
        tr = rows                          # single full-extent block (legal)
    elif rows <= tr_max:
        # guarantee >= 2 grid steps so v7x can use both TensorCores
        tr = _round_up(-(-rows // 2), 8)
    else:
        tr = tr_max                        # multiple of 8 by construction
    rows_pad = _round_up(rows, tr)
    total = rows_pad * LANES

    x_flat = x.reshape(-1).astype(jnp.float32)
    if total > n:
        # TODO(synk): at large n, replace this materialized pad (and the final
        # transpose below) with an in-kernel tail mask / bit-major consumers,
        # so wrapper glue does not re-touch more HBM bytes than the kernel.
        x_flat = jnp.pad(x_flat, (0, total - n))
    x2d = x_flat.reshape(rows_pad, LANES)

    grid = (rows_pad // tr,)
    cost = pl.CostEstimate(
        flops=30 * total,
        transcendentals=(Q_BITS * total) if training else 0,
        bytes_accessed=16 * total,         # x f32 in + q f32 out + 4x bf16 Q out
    )

    q2d, bits3d = pl.pallas_call(
        _make_kernel(training),
        out_shape=(
            jax.ShapeDtypeStruct((rows_pad, LANES), jnp.float32),
            jax.ShapeDtypeStruct((Q_BITS, rows_pad, LANES), jnp.bfloat16),
        ),
        grid=grid,
        in_specs=[
            pl.BlockSpec(memory_space=pltpu.MemorySpace.SMEM),   # aoff  scalars
            pl.BlockSpec(memory_space=pltpu.MemorySpace.SMEM),   # acoef scalars
            pl.BlockSpec((tr, LANES), lambda i: (i, 0)),          # x tile
        ],
        out_specs=(
            pl.BlockSpec((tr, LANES), lambda i: (i, 0)),          # q tile
            pl.BlockSpec((Q_BITS, tr, LANES), lambda i: (0, i, 0)),  # bit-major Q
        ),
        compiler_params=pltpu.CompilerParams(
            dimension_semantics=("parallel",),     # shard row tiles across TCs
            vmem_limit_bytes=vmem_limit,
        ),
        cost_estimate=cost,
    )(aoff, acoef, x2d)

    q = q2d.reshape(-1)[:n].reshape(B, P)
    Qbm = bits3d.reshape(Q_BITS, -1)[:, :n].reshape(Q_BITS, B, P)
    if bit_major_output:
        return q, Qbm, w_noisy.reshape(-1, 1)
    # PyTorch layout [B, P, Q_BITS] in f32 — only on the small unpadded slice.
    Q = jnp.transpose(Qbm, (1, 2, 0)).astype(jnp.float32)
    return q, Q, w_noisy.reshape(-1, 1)


def _reference(x, w_noisy_flat):
    """Pure-JAX transcription of the PyTorch forward for verification."""
    B, P = x.shape
    Q = jnp.zeros((B, P, Q_BITS), dtype=jnp.float32)
    m = w_noisy_flat.shape[0] - 1
    for j in reversed(range(Q_BITS)):
        bit_sum = w_noisy_flat[m] * VREF
        m -= 1
        for k in range(j + 1, Q_BITS):
            bit_sum = bit_sum + (Q[:, :, k] + 1) / 2 * w_noisy_flat[m] * VR
            m -= 1
        Q = Q.at[:, :, j].set(jnp.tanh(AMPLITUDE * (x - bit_sum + DELTA)))
    q = jnp.zeros((B, P), dtype=jnp.float32)
    for b in reversed(range(Q_BITS)):
        q = q + (Q[:, :, b] + 1) / 2 * VR * 2 ** b
    return q, Q


if __name__ == "__main__":
    key = jax.random.PRNGKey(0)
    kx, kn, kx2 = jax.random.split(key, 3)

    w_tensor = jnp.asarray(_build_w_tensor())        # (10, 1) deterministic init

    # ---- small shape (grid=(1,)): strict check vs the pure-JAX reference ----
    B = 2
    x = jax.random.uniform(kx, (B, NUM_ADCS), dtype=jnp.float32,
                           minval=0.0, maxval=VDD)
    q, Q, w_noisy = quantization_layer_forward(x, w_tensor, noise_key=kn)
    jax.block_until_ready((q, Q, w_noisy))
    assert q.shape == (B, NUM_ADCS)
    assert Q.shape == (B, NUM_ADCS, Q_BITS)
    assert w_noisy.shape == (10, 1)

    q_ref, Q_ref = _reference(x, w_noisy.reshape(-1))
    np.testing.assert_allclose(np.asarray(q), np.asarray(q_ref), atol=2e-2, rtol=0)
    np.testing.assert_allclose(np.asarray(Q), np.asarray(Q_ref), atol=5e-2, rtol=0)

    # ---- multi-tile coverage: rows=18 -> >=2 grid steps, padded tail, n%LANES!=0 ----
    B2 = 2500
    x2 = jax.random.uniform(kx2, (B2, NUM_ADCS), dtype=jnp.float32,
                            minval=0.0, maxval=VDD)
    q2, Q2, w_noisy2 = quantization_layer_forward(x2, w_tensor, noise_key=kn)
    jax.block_until_ready((q2, Q2))
    q2_ref, Q2_ref = _reference(x2, w_noisy2.reshape(-1))
    # tanh(1e4 * .) flips hard at decision boundaries, so a handful of elements
    # may legitimately disagree (f32 rounding of folded vs unfolded constants);
    # require >=99.9% agreement — a structural tiling bug would scramble far more.
    bad_q = float(np.mean(np.abs(np.asarray(q2) - np.asarray(q2_ref)) > 2e-2))
    bad_Q = float(np.mean(np.abs(np.asarray(Q2) - np.asarray(Q2_ref)) > 5e-2))
    assert bad_q < 1e-3 and bad_Q < 1e-3, (bad_q, bad_Q)

    # ---- rows > tile-cap path: force tiny cap -> 3 grid steps, same answers ----
    q3, Q3, _ = quantization_layer_forward(x2, w_tensor, noise_key=kn,
                                           max_rows_per_tile=8)
    jax.block_until_ready((q3, Q3))
    bad_q3 = float(np.mean(np.abs(np.asarray(q3) - np.asarray(q2)) > 2e-2))
    bad_Q3 = float(np.mean(np.abs(np.asarray(Q3) - np.asarray(Q2)) > 5e-2))
    assert bad_q3 < 1e-3 and bad_Q3 < 1e-3, (bad_q3, bad_Q3)

    print("KERNEL_OK")
</pallas_src>

<mosaic_0001>
module attributes {stable_mosaic.version = 11 : i64} {
  func.func @kernel(%arg0: i32, %arg1: memref<4xf32, #tpu.memory_space<smem>>, %arg2: memref<6xf32, #tpu.memory_space<smem>>, %arg3: memref<1x1024xf32, #tpu.memory_space<vmem>>, %arg4: memref<1x1024xf32, #tpu.memory_space<vmem>>, %arg5: memref<4x1x1024xbf16, #tpu.memory_space<vmem>>) attributes {dimension_semantics = [#tpu.dimension_semantics<parallel>], iteration_bounds = array<i64: 1>, scalar_prefetch = 0 : i64, scratch_operands = 0 : i64, tpu.core_type = #tpu.core_type<tc>, window_params = [{transform_indices = @transform_0, window_bounds = array<i64: 4>}, {transform_indices = @transform_1, window_bounds = array<i64: 6>}, {transform_indices = @transform_2, window_bounds = array<i64: 1, 1024>}, {transform_indices = @transform_3, window_bounds = array<i64: 1, 1024>}, {transform_indices = @transform_4, window_bounds = array<i64: 4, 1, 1024>}]} {
    %c0 = arith.constant 0 : index
    %0 = memref.load %arg1[%c0] : memref<4xf32, #tpu.memory_space<smem>>
    %c1 = arith.constant 1 : index
    %1 = memref.load %arg1[%c1] : memref<4xf32, #tpu.memory_space<smem>>
    %c2 = arith.constant 2 : index
    %2 = memref.load %arg1[%c2] : memref<4xf32, #tpu.memory_space<smem>>
    %c3 = arith.constant 3 : index
    %3 = memref.load %arg1[%c3] : memref<4xf32, #tpu.memory_space<smem>>
    %c0_0 = arith.constant 0 : index
    %4 = memref.load %arg2[%c0_0] : memref<6xf32, #tpu.memory_space<smem>>
    %c1_1 = arith.constant 1 : index
    %5 = memref.load %arg2[%c1_1] : memref<6xf32, #tpu.memory_space<smem>>
    %c2_2 = arith.constant 2 : index
    %6 = memref.load %arg2[%c2_2] : memref<6xf32, #tpu.memory_space<smem>>
    %c3_3 = arith.constant 3 : index
    %7 = memref.load %arg2[%c3_3] : memref<6xf32, #tpu.memory_space<smem>>
    %c4 = arith.constant 4 : index
    %8 = memref.load %arg2[%c4] : memref<6xf32, #tpu.memory_space<smem>>
    %c5 = arith.constant 5 : index
    %9 = memref.load %arg2[%c5] : memref<6xf32, #tpu.memory_space<smem>>
    %c0_4 = arith.constant 0 : index
    %c0_5 = arith.constant 0 : index
    %10 = vector.load %arg3[%c0_4, %c0_5] : memref<1x1024xf32, #tpu.memory_space<vmem>>, vector<1x1024xf32>
    %cst = arith.constant 1.000000e+04 : f32
    %11 = vector.broadcast %cst : f32 to vector<1x1024xf32>
    %12 = arith.mulf %11, %10 : vector<1x1024xf32>
    %13 = vector.broadcast %3 : f32 to vector<1x1024xf32>
    %14 = arith.subf %12, %13 : vector<1x1024xf32>
    %15 = math.tanh %14 : vector<1x1024xf32>
    %16 = vector.broadcast %2 : f32 to vector<1x1024xf32>
    %17 = arith.subf %12, %16 : vector<1x1024xf32>
    %18 = vector.broadcast %4 : f32 to vector<1x1024xf32>
    %19 = arith.mulf %18, %15 : vector<1x1024xf32>
    %20 = arith.subf %17, %19 : vector<1x1024xf32>
    %21 = math.tanh %20 : vector<1x1024xf32>
    %22 = vector.broadcast %1 : f32 to vector<1x1024xf32>
    %23 = arith.subf %12, %22 : vector<1x1024xf32>
    %24 = vector.broadcast %5 : f32 to vector<1x1024xf32>
    %25 = arith.mulf %24, %21 : vector<1x1024xf32>
    %26 = arith.subf %23, %25 : vector<1x1024xf32>
    %27 = vector.broadcast %6 : f32 to vector<1x1024xf32>
    %28 = arith.mulf %27, %15 : vector<1x1024xf32>
    %29 = arith.subf %26, %28 : vector<1x1024xf32>
    %30 = math.tanh %29 : vector<1x1024xf32>
    %31 = vector.broadcast %0 : f32 to vector<1x1024xf32>
    %32 = arith.subf %12, %31 : vector<1x1024xf32>
    %33 = vector.broadcast %7 : f32 to vector<1x1024xf32>
    %34 = arith.mulf %33, %30 : vector<1x1024xf32>
    %35 = arith.subf %32, %34 : vector<1x1024xf32>
    %36 = vector.broadcast %8 : f32 to vector<1x1024xf32>
    %37 = arith.mulf %36, %21 : vector<1x1024xf32>
    %38 = arith.subf %35, %37 : vector<1x1024xf32>
    %39 = vector.broadcast %9 : f32 to vector<1x1024xf32>
    %40 = arith.mulf %39, %15 : vector<1x1024xf32>
    %41 = arith.subf %38, %40 : vector<1x1024xf32>
    %42 = math.tanh %41 : vector<1x1024xf32>
    %cst_6 = arith.constant 3.125000e-02 : f32
    %43 = vector.broadcast %cst_6 : f32 to vector<1x1024xf32>
    %44 = arith.mulf %43, %42 : vector<1x1024xf32>
    %cst_7 = arith.constant 4.687500e-01 : f32
    %45 = vector.broadcast %cst_7 : f32 to vector<1x1024xf32>
    %46 = arith.addf %45, %44 : vector<1x1024xf32>
    %cst_8 = arith.constant 6.250000e-02 : f32
    %47 = vector.broadcast %cst_8 : f32 to vector<1x1024xf32>
    %48 = arith.mulf %47, %30 : vector<1x1024xf32>
    %49 = arith.addf %46, %48 : vector<1x1024xf32>
    %cst_9 = arith.constant 1.250000e-01 : f32
    %50 = vector.broadcast %cst_9 : f32 to vector<1x1024xf32>
    %51 = arith.mulf %50, %21 : vector<1x1024xf32>
    %52 = arith.addf %49, %51 : vector<1x1024xf32>
    %cst_10 = arith.constant 2.500000e-01 : f32
    %53 = vector.broadcast %cst_10 : f32 to vector<1x1024xf32>
    %54 = arith.mulf %53, %15 : vector<1x1024xf32>
    %55 = arith.addf %52, %54 : vector<1x1024xf32>
    %c0_11 = arith.constant 0 : index
    %c0_12 = arith.constant 0 : index
    %56 = vector.load %arg4[%c0_11, %c0_12] : memref<1x1024xf32, #tpu.memory_space<vmem>>, vector<1x1024xf32>
    tpu.vector_store %arg4[%c0_11, %c0_12], %55 {strides = array<i32>} : memref<1x1024xf32, #tpu.memory_space<vmem>>, vector<1x1024xf32>,
    %57 = arith.truncf %42 : vector<1x1024xf32> to vector<1x1024xbf16>
    %c0_13 = arith.constant 0 : index
    %c0_14 = arith.constant 0 : index
    %c0_15 = arith.constant 0 : index
    %58 = vector.load %arg5[%c0_13, %c0_14, %c0_15] : memref<4x1x1024xbf16, #tpu.memory_space<vmem>>, vector<1x1x1024xbf16>
    %59 = vector.shape_cast %58 : vector<1x1x1024xbf16> to vector<1x1024xbf16>
    %60 = vector.shape_cast %57 : vector<1x1024xbf16> to vector<1x1x1024xbf16>
    tpu.vector_store %arg5[%c0_13, %c0_14, %c0_15], %60 {strides = array<i32>} : memref<4x1x1024xbf16, #tpu.memory_space<vmem>>, vector<1x1x1024xbf16>,
    %61 = arith.truncf %30 : vector<1x1024xf32> to vector<1x1024xbf16>
    %c1_16 = arith.constant 1 : index
    %c0_17 = arith.constant 0 : index
    %c0_18 = arith.constant 0 : index
    %62 = vector.load %arg5[%c1_16, %c0_17, %c0_18] : memref<4x1x1024xbf16, #tpu.memory_space<vmem>>, vector<1x1x1024xbf16>
    %63 = vector.shape_cast %62 : vector<1x1x1024xbf16> to vector<1x1024xbf16>
    %64 = vector.shape_cast %61 : vector<1x1024xbf16> to vector<1x1x1024xbf16>
    tpu.vector_store %arg5[%c1_16, %c0_17, %c0_18], %64 {strides = array<i32>} : memref<4x1x1024xbf16, #tpu.memory_space<vmem>>, vector<1x1x1024xbf16>,
    %65 = arith.truncf %21 : vector<1x1024xf32> to vector<1x1024xbf16>
    %c2_19 = arith.constant 2 : index
    %c0_20 = arith.constant 0 : index
    %c0_21 = arith.constant 0 : index
    %66 = vector.load %arg5[%c2_19, %c0_20, %c0_21] : memref<4x1x1024xbf16, #tpu.memory_space<vmem>>, vector<1x1x1024xbf16>
    %67 = vector.shape_cast %66 : vector<1x1x1024xbf16> to vector<1x1024xbf16>
    %68 = vector.shape_cast %65 : vector<1x1024xbf16> to vector<1x1x1024xbf16>
    tpu.vector_store %arg5[%c2_19, %c0_20, %c0_21], %68 {strides = array<i32>} : memref<4x1x1024xbf16, #tpu.memory_space<vmem>>, vector<1x1x1024xbf16>,
    %69 = arith.truncf %15 : vector<1x1024xf32> to vector<1x1024xbf16>
    %c3_22 = arith.constant 3 : index
    %c0_23 = arith.constant 0 : index
    %c0_24 = arith.constant 0 : index
    %70 = vector.load %arg5[%c3_22, %c0_23, %c0_24] : memref<4x1x1024xbf16, #tpu.memory_space<vmem>>, vector<1x1x1024xbf16>
    %71 = vector.shape_cast %70 : vector<1x1x1024xbf16> to vector<1x1024xbf16>
    %72 = vector.shape_cast %69 : vector<1x1024xbf16> to vector<1x1x1024xbf16>
    tpu.vector_store %arg5[%c3_22, %c0_23, %c0_24], %72 {strides = array<i32>} : memref<4x1x1024xbf16, #tpu.memory_space<vmem>>, vector<1x1x1024xbf16>,
    return
  }
  func.func @transform_0(%arg0: i32) -> i32 {
    %c0_i32 = arith.constant 0 : i32
    %c0_i32_0 = arith.constant 0 : i32
    return %c0_i32 : i32
  }
  func.func @transform_1(%arg0: i32) -> i32 {
    %c0_i32 = arith.constant 0 : i32
    %c0_i32_0 = arith.constant 0 : i32
    return %c0_i32 : i32
  }
  func.func @transform_2(%arg0: i32) -> (i32, i32) {
    %c0_i32 = arith.constant 0 : i32
    %c0_i32_0 = arith.constant 0 : i32
    return %arg0, %c0_i32 : i32, i32
  }
  func.func @transform_3(%arg0: i32) -> (i32, i32) {
    %c0_i32 = arith.constant 0 : i32
    %c0_i32_0 = arith.constant 0 : i32
    return %arg0, %c0_i32 : i32, i32
  }
  func.func @transform_4(%arg0: i32) -> (i32, i32, i32) {
    %c0_i32 = arith.constant 0 : i32
    %c0_i32_0 = arith.constant 0 : i32
    %c0_i32_1 = arith.constant 0 : i32
    return %c0_i32, %arg0, %c0_i32_0 : i32, i32, i32
  }
}

</mosaic_0001>

<bundles_post_ra>
// kernel: tpu_custom_call.1
= control target key start
LH: loop header
LB: loop body
LE: loop exit
PB: predicated region body
PF: predicated region fallthrough
CT: control target
= control target key end

     0   :  { %10 = vsyncpa [#allocation5], 0  ;;  %s932_s0 = inlined_call_operand.hbm [shape: f32[4], index: 0, kind: input, shape index: {}]   ;;  %s933_s1 = inlined_call_operand.vmem [shape: f32[6], index: 1, kind: input, shape index: {}]   ;;  %s934_s2 = inlined_call_operand.hbm [shape: f32[1,1024], index: 2, kind: input, shape index: {}]   ;;  %s935_s3 = inlined_call_operand.hbm [shape: f32[1,1024], index: 3, kind: output, shape index: {0}]   ;;  %s936_s4 = inlined_call_operand.vmem [shape: bf16[4,1,1024], index: 4, kind: output, shape index: {1}]  }
   0x1   :  { %11 = vsyncpa [#allocation6], 0 }
   0x2   :  { %12 = vsyncpa [#allocation3], 0 }
   0x3   :  { %13 = vsyncpa [#allocation4], 0  ;;  %s28_s17 = sshll.u32 %s933_s1, 4  ;;  %s709_s18 = smov [#allocation2]   ;;  %s29_s17 = int_to_ptr.vmem [resolvable:$true] %s28_s17 }
   0x4   :  { %21 = dma.hbm_to_smem %s932_s0, 16, %s709_s18, [#allocation5]  }
   0x5   :  { %s649_s21 = scalar_lea.vmem %s29_s17, 16  ;;  %p654_p1 = scmp.lt.s32.totalorder %s29_s17, %s29_s17 }
   0x6   :  { %p650_p0 = scmp.ne.s32.totalorder %s29_s17, %s649_s21  ;;  %p655_p2 = scmp.lt.s32.totalorder %s649_s21, %s649_s21 }
   0x8   :  { %p656_p3 = por %p655_p2, %p654_p1 }
   0xa   :  { %p657_p4 = pnand %p656_p3, %p650_p0 }
   0xc   :  { %660 = shalt.err (!%p657_p4)
}
   0xd   :  { %s710_s22 = smov [#allocation7]   ;;  %s711_s23 = smov [#allocation8]  }
   0xe   :  { %31 = dma.vmem_to_smem %s29_s17, 16, %s710_s22, [#allocation6]  }
   0xf   :  { %s38_s24 = sshll.u32 %s711_s23, 4  ;;  %s39_s24 = int_to_ptr.vmem [resolvable:$true] %s38_s24 }
  0x10   :  { %s669_s25 = scalar_lea.vmem %s39_s24, 128  ;;  %p674_p6 = scmp.lt.s32.totalorder %s39_s24, %s39_s24 }
  0x11   :  { %p670_p5 = scmp.ne.s32.totalorder %s39_s24, %s669_s25  ;;  %p675_p7 = scmp.lt.s32.totalorder %s669_s25, %s669_s25 }
  0x13   :  { %p676_p8 = por %p675_p7, %p674_p6 }
  0x15   :  { %p677_p9 = pnand %p676_p8, %p670_p5 }
  0x17   :  { %680 = shalt.err (!%p677_p9)
}
  0x18   :  { %41 = dma.hbm_to_vmem [thread:$0]  %s934_s2, 128, %s39_s24, [#allocation3]  }
  0x19   :  { %701 = dma.done.wait [#allocation5], 16  }
  0x1a   :  { %702 = vsyncadd [#allocation5], 4294967280 }
  0x1b   :  { %703 = dma.done.wait [#allocation6], 16  }
  0x1c   :  { %704 = vsyncadd [#allocation6], 4294967280 }
  0x1d   :  { %705 = dma.done.wait [#allocation3], 128  }
  0x1e   :  { %706 = vsyncadd [#allocation3], 4294967168 }
  0x1f   :  { %51 = sfence }
  0x20   :  { %s600_s26 = sld [smem:[#allocation2 + $0x3]]  ;;  %v62_v0 = vld [vmem:[#allocation8] sm:$0xff]  ;;  %vm210_vm0 = vcmask 1040384   ;;  %vm211_vm1 = vsmask.f32 256  ;;  %vm213_vm2 = vcmask 1041409   ;;  %v104_v6 = vlaneseq }
  0x21   :  { %v748_v1 = vmul.f32 10000.0, %v62_v0  ;;  %vm214_vm3 = vsmask.f32 1280  ;;  %vm751_vm4 = vmand %vm210_vm0, %vm211_vm1  ;;  %vm217_vm6 = vcmask 1042434   ;;  %vm218_vm7 = vsmask.f32 2304 }
  0x22   :  { %vm755_vm5 = vmand %vm213_vm2, %vm214_vm3  ;;  %s599_s2 = sld [smem:[#allocation2 + $0x2]]  ;;  %vm221_vm10 = vcmask 1043459   ;;  %vm222_vm11 = vsmask.f32 3328  ;;  %v105_v7 = vshrl.u32 %v104_v6, 7  ;;  %vm225_vm14 = vcmask 1044484  }
  0x23   :  { %vm216_vm8 = vmor %vm755_vm5, %vm751_vm4  ;;  %s56_s27 = sld [smem:[#allocation7]]  ;;  %v712_v8 = vmov 1966171168   ;;  %vm226_vm15 = vsmask.f32 4352  ;;  %vm229_vm2 = vcmask 1045509  }
  0x24   :  { %vm219_vm9 = vmand %vm217_vm6, %vm218_vm7  ;;  %v165_v9 = vunpack.c.l.s4 %v712_v8  ;;  %v771_v13 = vsub.s32 0, %v105_v7  ;;  %v773_v14 = vsub.s32 1, %v105_v7  ;;  %v775_v15 = vsub.s32 2, %v105_v7  ;;  %s598_s28 = sld [smem:[#allocation2 + $0x1]]  ;;  %v626_v51 = vld [vmem:[%s936_s4 + $0x18] sm:$0xff]  ;;  %s713_s21 = smov [#allocation9]  }
  0x25   :  { %vm763_vm12 = vmor %vm219_vm9, %vm216_vm8  ;;  %v781_v18 = vsub.s32 3, %v105_v7  ;;  %v783_v19 = vsub.s32 4, %v105_v7  ;;  %v785_v20 = vsub.s32 5, %v105_v7  ;;  %v788_v22 = vsub.s32 6, %v105_v7  ;;  %s601_s29 = sld [smem:[#allocation7 + $0x1]]  ;;  %s583_s22 = sshll.u32 %s713_s21, 4  ;;  %s584_s22 = int_to_ptr.vmem [resolvable:$true] %s583_s22 }
  0x26   :  { %v64_v2 = vstv %s600_s26  ;;  %vm767_vm13 = vmand %vm221_vm10, %vm222_vm11  ;;  %v166_v16 = vunpack.c.0.s8 %v165_v9  ;;  %vm230_vm3 = vsmask.f32 5376  ;;  %v792_v24 = vsub.s32 7, %v105_v7  ;;  %s602_s30 = sld [smem:[#allocation7 + $0x2]]  ;;  %s681_s25 = scalar_lea.vmem %s584_s22, 128 }
  0x27   :  { %v65_v3 = vsub.f32 %v748_v1, %v64_v2  ;;  %vm224_vm0 = vmor %vm767_vm13, %vm763_vm12  ;;  %vm233_vm5 = vcmask 1046534   ;;  %vm234_vm6 = vsmask.f32 6400  ;;  %vm237_vm10 = vcmask 1047559   ;;  %s52_s9 = sld [smem:[#allocation2]]  ;;  %p682_p10 = scmp.ne.s32.totalorder %s584_s22, %s681_s25 }
  0x28   :  { %v67_v12 = vstv %s599_s2  ;;  %vm227_vm1 = vmand %vm225_vm14, %vm226_vm15  ;;  %v795_v26 = vsub.s32 %v166_v16, %v105_v7  ;;  %vm238_vm11 = vsmask.f32 7424  ;;  %s603_s10 = sld [smem:[#allocation7 + $0x3]]  ;;  %p686_p11 = scmp.lt.s32.totalorder %s584_s22, %s584_s22 }
  0x29   :  { %633 = vtanh.f32 %v65_v3  ;;  %v69_v17 = vstv %s56_s27  ;;  %v68_v21 = vsub.f32 %v748_v1, %v67_v12  ;;  %vm797_vm4 = vmor %vm227_vm1, %vm224_vm0  ;;  %s605_s11 = sld [smem:[#allocation7 + $0x5]]  ;;  %p687_p12 = scmp.lt.s32.totalorder %s681_s25, %s681_s25 }
  0x2a   :  { %vm801_vm7 = vmand %vm229_vm2, %vm230_vm3  ;;  %v73_v52 = vstv %s598_s28  ;;  %s604_s12 = sld [smem:[#allocation7 + $0x4]] }
  0x2b   :  { %vm232_vm8 = vmor %vm801_vm7, %vm797_vm4  ;;  %v75_v54 = vstv %s601_s29  ;;  %v74_v57 = vsub.f32 %v748_v1, %v73_v52  ;;  %p688_p13 = por %p687_p12, %p686_p11 }
  0x2c   :  { %vm235_vm9 = vmand %vm233_vm5, %vm234_vm6  ;;  %v78_v55 = vstv %s602_s30 }
  0x2d   :  { %vm236_vm12 = vmor %vm235_vm9, %vm232_vm8  ;;  %p689_p0 = pnand %p688_p13, %p682_p10 }
  0x2e   :  { %vm239_vm13 = vmand %vm237_vm10, %vm238_vm11 }
  0x2f   :  { %vm833_vm14 = vmor %vm239_vm13, %vm236_vm12 }
  0x36   :  { %v790_v23 = vpop.eup %633 }
  0x37   :  { %v70_v25 = vmul.f32 %v790_v23, %v69_v17  ;;  %v470_v29 = vrot.slane %v790_v23, %v771_v13  ;;  %v474_v30 = vrot.slane %v790_v23, %v773_v14  ;;  %v478_v31 = vrot.slane %v790_v23, %v775_v15 }
  0x38   :  { %v482_v32 = vrot.slane %v790_v23, %v781_v18  ;;  %v486_v34 = vrot.slane %v790_v23, %v783_v19  ;;  %v490_v35 = vrot.slane %v790_v23, %v785_v20  ;;  %v494_v36 = vrot.slane %v790_v23, %v788_v22 }
  0x39   :  { %v71_v33 = vsub.f32 %v68_v21, %v70_v25  ;;  %v498_v37 = vrot.slane %v790_v23, %v792_v24  ;;  %v622_v38 = vpack.c.bf16 %v474_v30, %v470_v29  ;;  %v79_v60 = vmul.f32 %v790_v23, %v78_v55  ;;  %v620_v30 = vld [vmem:[%s936_s4 + $0x10] sm:$0xff] }
  0x3a   :  { %v623_v39 = vpack.c.bf16 %v482_v32, %v478_v31  ;;  %v624_v40 = vpack.c.bf16 %v490_v35, %v486_v34  ;;  %v90_v34 = vstv %s605_s11  ;;  %v84_v35 = vstv %s603_s10 }
  0x3b   :  { %635 = vtanh.f32 %v71_v33  ;;  %v625_v41 = vpack.c.bf16 %v498_v37, %v494_v36  ;;  %v533_v42 = vrot.slane %v622_v38, %v795_v26  ;;  %v82_v33 = vstv %s52_s9 }
  0x3c   :  { %v540_v43 = vrot.slane %v623_v39, %v795_v26  ;;  %v547_v44 = vrot.slane %v624_v40, %v795_v26  ;;  %v87_v36 = vstv %s604_s12  ;;  %v83_v37 = vsub.f32 %v748_v1, %v82_v33 }
  0x3d   :  { %v554_v45 = vrot.slane %v625_v41, %v795_v26  ;;  %v91_v39 = vmul.f32 %v790_v23, %v90_v34 }
  0x3e   :  { %v555_v46 = vcombine.low %v533_v42, %v540_v43 }
  0x3f   :  { %v556_v47 = vcombine.low %v547_v44, %v554_v45 }
  0x40   :  { %v563_v48 = vrot.slane %v555_v46, %v795_v26 }
  0x41   :  { %v570_v49 = vrot.slane %v556_v47, %v795_v26 }
  0x43   :  { %v571_v53 = vcombine.low %v563_v48, %v570_v49 }
  0x45   :  { %v575_v56 = vsel %vm833_vm14, %v571_v53, %v626_v51 }
  0x46   :  { %627 = vst [vmem:[%s936_s4 + $0x18] sm:$0xff] %v575_v56 }
  0x48   :  { %v846_v58 = vpop.eup %635 }
  0x49   :  { %v76_v59 = vmul.f32 %v846_v58, %v75_v54  ;;  %v359_v61 = vrot.slane %v846_v58, %v771_v13  ;;  %v363_v62 = vrot.slane %v846_v58, %v773_v14  ;;  %v367_v63 = vrot.slane %v846_v58, %v775_v15 }
  0x4a   :  { %v371_v0 = vrot.slane %v846_v58, %v781_v18  ;;  %v375_v2 = vrot.slane %v846_v58, %v783_v19  ;;  %v379_v4 = vrot.slane %v846_v58, %v785_v20  ;;  %v383_v5 = vrot.slane %v846_v58, %v788_v22 }
  0x4b   :  { %v77_v3 = vsub.f32 %v74_v57, %v76_v59  ;;  %v387_v6 = vrot.slane %v846_v58, %v792_v24  ;;  %v616_v7 = vpack.c.bf16 %v363_v62, %v359_v61  ;;  %v88_v41 = vmul.f32 %v846_v58, %v87_v36 }
  0x4c   :  { %v617_v8 = vpack.c.bf16 %v371_v0, %v367_v63  ;;  %v618_v10 = vpack.c.bf16 %v379_v4, %v375_v2 }
  0x4d   :  { %v80_v9 = vsub.f32 %v77_v3, %v79_v60  ;;  %v619_v11 = vpack.c.bf16 %v387_v6, %v383_v5  ;;  %v422_v12 = vrot.slane %v616_v7, %v795_v26  ;;  %v614_v3 = vld [vmem:[%s936_s4 + $0x8] sm:$0xff] }
  0x4e   :  { %v429_v16 = vrot.slane %v617_v8, %v795_v26  ;;  %v436_v17 = vrot.slane %v618_v10, %v795_v26 }
  0x4f   :  { %637 = vtanh.f32 %v80_v9  ;;  %v443_v21 = vrot.slane %v619_v11, %v795_v26 }
  0x50   :  { %v444_v25 = vcombine.low %v422_v12, %v429_v16 }
  0x51   :  { %v445_v27 = vcombine.low %v436_v17, %v443_v21 }
  0x52   :  { %v452_v28 = vrot.slane %v444_v25, %v795_v26 }
  0x53   :  { %v459_v29 = vrot.slane %v445_v27, %v795_v26  ;;  %v98_v27 = vmul.f32 0.125, %v846_v58 }
  0x55   :  { %v460_v31 = vcombine.low %v452_v28, %v459_v29 }
  0x57   :  { %v464_v32 = vsel %vm833_vm14, %v460_v31, %v620_v30 }
  0x58   :  { %621 = vst [vmem:[%s936_s4 + $0x10] sm:$0xff] %v464_v32 }
  0x5c   :  { %v638_v38 = vpop.eup %637 }
  0x5d   :  { %v85_v40 = vmul.f32 %v638_v38, %v84_v35  ;;  %v248_v42 = vrot.slane %v638_v38, %v771_v13  ;;  %v252_v43 = vrot.slane %v638_v38, %v773_v14  ;;  %v256_v44 = vrot.slane %v638_v38, %v775_v15  ;;  %v241_v35 = vld [vmem:[%s936_s4] sm:$0xff] }
  0x5e   :  { %v260_v45 = vrot.slane %v638_v38, %v781_v18  ;;  %v264_v46 = vrot.slane %v638_v38, %v783_v19  ;;  %v268_v47 = vrot.slane %v638_v38, %v785_v20  ;;  %v272_v1 = vrot.slane %v638_v38, %v788_v22 }
  0x5f   :  { %v86_v48 = vsub.f32 %v83_v37, %v85_v40  ;;  %v276_v49 = vrot.slane %v638_v38, %v792_v24  ;;  %v610_v51 = vpack.c.bf16 %v252_v43, %v248_v42  ;;  %v96_v7 = vmul.f32 0.0625, %v638_v38 }
  0x60   :  { %v611_v52 = vpack.c.bf16 %v260_v45, %v256_v44  ;;  %v612_v53 = vpack.c.bf16 %v268_v47, %v264_v46 }
  0x61   :  { %v89_v54 = vsub.f32 %v86_v48, %v88_v41  ;;  %v613_v55 = vpack.c.bf16 %v276_v49, %v272_v1  ;;  %v311_v56 = vrot.slane %v610_v51, %v795_v26 }
  0x62   :  { %v318_v57 = vrot.slane %v611_v52, %v795_v26  ;;  %v325_v59 = vrot.slane %v612_v53, %v795_v26 }
  0x63   :  { %v92_v60 = vsub.f32 %v89_v54, %v91_v39  ;;  %v332_v61 = vrot.slane %v613_v55, %v795_v26 }
  0x64   :  { %v333_v62 = vcombine.low %v311_v56, %v318_v57 }
  0x65   :  { %639 = vtanh.f32 %v92_v60  ;;  %v334_v63 = vcombine.low %v325_v59, %v332_v61 }
  0x66   :  { %v341_v0 = vrot.slane %v333_v62, %v795_v26 }
  0x67   :  { %v348_v2 = vrot.slane %v334_v63, %v795_v26 }
  0x69   :  { %v349_v4 = vcombine.low %v341_v0, %v348_v2 }
  0x6b   :  { %v353_v5 = vsel %vm833_vm14, %v349_v4, %v614_v3 }
  0x6c   :  { %615 = vst [vmem:[%s936_s4 + $0x8] sm:$0xff] %v353_v5 }
  0x72   :  { %v640_v6 = vpop.eup %639 }
  0x73   :  { %v94_v8 = vmul.f32 0.03125, %v640_v6  ;;  %v107_v9 = vrot.slane %v640_v6, %v771_v13  ;;  %v111_v10 = vrot.slane %v640_v6, %v773_v14  ;;  %v115_v11 = vrot.slane %v640_v6, %v775_v15 }
  0x74   :  { %v119_v12 = vrot.slane %v640_v6, %v781_v18  ;;  %v123_v16 = vrot.slane %v640_v6, %v783_v19  ;;  %v127_v17 = vrot.slane %v640_v6, %v785_v20  ;;  %v131_v21 = vrot.slane %v640_v6, %v788_v22 }
  0x75   :  { %v95_v25 = vadd.f32 0.46875, %v94_v8  ;;  %v135_v28 = vrot.slane %v640_v6, %v792_v24  ;;  %v606_v29 = vpack.c.bf16 %v111_v10, %v107_v9  ;;  %v100_v14 = vmul.f32 0.25, %v790_v23 }
  0x76   :  { %v607_v30 = vpack.c.bf16 %v119_v12, %v115_v11  ;;  %v608_v13 = vpack.c.bf16 %v127_v17, %v123_v16 }
  0x77   :  { %v97_v31 = vadd.f32 %v96_v7, %v95_v25  ;;  %v609_v15 = vpack.c.bf16 %v135_v28, %v131_v21  ;;  %v170_v18 = vrot.slane %v606_v29, %v795_v26 }
  0x78   :  { %v177_v19 = vrot.slane %v607_v30, %v795_v26  ;;  %v184_v20 = vrot.slane %v608_v13, %v795_v26 }
  0x79   :  { %v99_v22 = vadd.f32 %v98_v27, %v97_v31  ;;  %v191_v58 = vrot.slane %v609_v15, %v795_v26 }
  0x7a   :  { %v192_v32 = vcombine.low %v170_v18, %v177_v19 }
  0x7b   :  { %v101_v24 = vadd.f32 %v100_v14, %v99_v22  ;;  %v193_v33 = vcombine.low %v184_v20, %v191_v58 }
  0x7c   :  { %v200_v34 = vrot.slane %v192_v32, %v795_v26 }
  0x7d   :  { %102 = vst [vmem:[#allocation9] sm:$0xff] %v101_v24  ;;  %v207_v23 = vrot.slane %v193_v33, %v795_v26 }
  0x7e   :  { %692 = shalt.err (!%p689_p0)
}
  0x7f   :  { %586 = dma.vmem_to_hbm [thread:$0]  %s584_s22, 128, %s935_s3, [#allocation4]   ;;  %v208_v36 = vcombine.low %v200_v34, %v207_v23 }
  0x81   :  { %v242_v37 = vsel %vm833_vm14, %v208_v36, %v241_v35 }
  0x82   :  { %243 = vst [vmem:[%s936_s4] sm:$0xff] %v242_v37 }
  0x83   :  { %707 = dma.done.wait [#allocation4], 128  }
  0x84   :  { %708 = vsyncadd [#allocation4], 4294967168 }
  0x85   :  { %594 = vsyncpa [#allocation3], 1 }
  0x86   :  { %595 = vsyncpa [#allocation4], 1 }
  0x87   :  { %596 = vsyncpa [#allocation5], 1 }
  0x88   :  { %597 = vsyncpa [#allocation6], 1 }

</bundles_post_ra>
